<compile_context>
chip_gen: v6e
topology: v6e:2x2x1
jax: 0.10.0
libtpu: 0.0.40
codegen_flags: <defaults>
</compile_context>

<pallas_src>
import jax
import jax.numpy as jnp
from jax.experimental import pallas as pl
from jax.experimental.pallas import tpu as pltpu


# ---------------------------------------------------------------------------
# Fully fused fast path: reduce + softmax + combine in ONE kernel (no grid)
# ---------------------------------------------------------------------------
def _make_fused_kernel(n_rows):
    inv_n = 1.0 / float(n_rows)

    def kernel(bb_ref, x1_ref, x2_ref, w1a_ref, b1a_ref, w1b_ref,
               w2a_ref, b2a_ref, w2b_ref, o_ref):
        x1 = x1_ref[...]
        x2 = x2_ref[...]
        h1 = jnp.tanh(
            jnp.dot(x1, w1a_ref[...], preferred_element_type=jnp.float32)
            + b1a_ref[...])
        h2 = jnp.tanh(
            jnp.dot(x2, w2a_ref[...], preferred_element_type=jnp.float32)
            + b2a_ref[...])
        # mean is linear -> reduce first, then the (H,) projection as a dot.
        s1 = jnp.sum(h1, axis=0, keepdims=True)                       # (1, H)
        s2 = jnp.sum(h2, axis=0, keepdims=True)                       # (1, H)
        l1 = jnp.sum(s1 * w1b_ref[...], axis=1, keepdims=True) * inv_n + bb_ref[0]
        l2 = jnp.sum(s2 * w2b_ref[...], axis=1, keepdims=True) * inv_n + bb_ref[1]
        m = jnp.maximum(l1, l2)
        e1 = jnp.exp(l1 - m)
        e2 = jnp.exp(l2 - m)
        inv = 1.0 / (e1 + e2)
        sm1 = e1 * inv                                                 # softmax(w1)
        sm2 = e2 * inv                                                 # softmax(w2)
        # PyTorch module swaps the weights: output = sm2 * input_1 + sm1 * input_2
        o_ref[...] = x1 * sm2 + x2 * sm1

    return kernel


# ---------------------------------------------------------------------------
# Pass 1 (large inputs): gridded reduce with fused in-kernel softmax tail
# ---------------------------------------------------------------------------
def _make_pass1_kernel(n_total, tile_n, num_tiles):
    inv_n = 1.0 / float(n_total)
    ragged = (n_total % tile_n) != 0
    last = num_tiles - 1

    def kernel(bb_ref, x1_ref, x2_ref, w1a_ref, b1a_ref, w1b_ref,
               w2a_ref, b2a_ref, w2b_ref, w_out_ref, acc1_ref, acc2_ref):
        i = pl.program_id(0)

        @pl.when(i == 0)
        def _init():
            acc1_ref[...] = jnp.zeros_like(acc1_ref)
            acc2_ref[...] = jnp.zeros_like(acc2_ref)

        h1 = jnp.tanh(
            jnp.dot(x1_ref[...], w1a_ref[...], preferred_element_type=jnp.float32)
            + b1a_ref[...])
        h2 = jnp.tanh(
            jnp.dot(x2_ref[...], w2a_ref[...], preferred_element_type=jnp.float32)
            + b2a_ref[...])

        # Accumulate into (tn, H) scratch: pure VALU vreg adds, no per-step
        # cross-sublane reduce, no masked output RMW.  Ragged mask only on
        # the last tile.
        if ragged:
            @pl.when(i < last)
            def _full_tile():
                acc1_ref[...] += h1
                acc2_ref[...] += h2

            @pl.when(i == last)
            def _ragged_tile():
                rows = (jax.lax.broadcasted_iota(jnp.int32, (tile_n, 1), 0)
                        + i * tile_n)
                valid = rows < n_total
                acc1_ref[...] += jnp.where(valid, h1, 0.0)
                acc2_ref[...] += jnp.where(valid, h2, 0.0)
        else:
            acc1_ref[...] += h1
            acc2_ref[...] += h2

        # Fused scalar tail on the last grid step: sublane reduce, projection,
        # mean and 2-way softmax, all in-kernel.  Weights go out as a tiny
        # lane-padded (1, 128) block: lane 0 = softmax(w1), lane 1 = softmax(w2).
        @pl.when(i == last)
        def _tail():
            s1 = jnp.sum(acc1_ref[...], axis=0, keepdims=True)        # (1, H)
            s2 = jnp.sum(acc2_ref[...], axis=0, keepdims=True)
            l1 = jnp.sum(s1 * w1b_ref[...], axis=1, keepdims=True) * inv_n + bb_ref[0]
            l2 = jnp.sum(s2 * w2b_ref[...], axis=1, keepdims=True) * inv_n + bb_ref[1]
            m = jnp.maximum(l1, l2)
            e1 = jnp.exp(l1 - m)
            e2 = jnp.exp(l2 - m)
            inv = 1.0 / (e1 + e2)
            sm1 = e1 * inv
            sm2 = e2 * inv
            lane = jax.lax.broadcasted_iota(jnp.int32, (1, 128), 1)
            w_out_ref[...] = jnp.where(lane == 0, sm1,
                                       jnp.where(lane == 1, sm2, 0.0))

    return kernel


# ---------------------------------------------------------------------------
# Pass 2 (large inputs): elementwise combine, softmax weights in SMEM
# ---------------------------------------------------------------------------
def _combine_kernel(w_ref, x1_ref, x2_ref, o_ref):
    # PyTorch: output = softmax_w2 * input_1 + softmax_w1 * input_2 (swapped)
    o_ref[...] = w_ref[0, 1] * x1_ref[...] + w_ref[0, 0] * x2_ref[...]


# ---------------------------------------------------------------------------
# Wrapper
# ---------------------------------------------------------------------------
def cross_attention_pallas(x1, x2, params, force_two_pass=False):
    """x1, x2: (B, S, H) float32. Returns (B, S, H)."""
    (w1a, b1a, w1b, b1b, w2a, b2a, w2b, b2b) = params
    B, S, H = x1.shape
    N = B * S

    x1f = x1.reshape(N, H).astype(jnp.float32)
    x2f = x2.reshape(N, H).astype(jnp.float32)
    w1a_f = w1a.astype(jnp.float32)
    w2a_f = w2a.astype(jnp.float32)
    b1a_r = b1a.reshape(1, H).astype(jnp.float32)
    b2a_r = b2a.reshape(1, H).astype(jnp.float32)
    w1b_r = w1b.reshape(1, H).astype(jnp.float32)
    w2b_r = w2b.reshape(1, H).astype(jnp.float32)
    bb = jnp.stack([b1b.reshape(()), b2b.reshape(())]).astype(jnp.float32)   # (2,)

    # --------------------------- fast path ----------------------------------
    lanes = ((H + 127) // 128) * 128           # VMEM lane padding for H < 128
    fused_vmem = 6 * N * lanes * 4 + 4 * H * lanes * 4
    use_fast = (fused_vmem <= (16 << 20)) or (N < 16)

    if use_fast and not force_two_pass:
        out = pl.pallas_call(
            _make_fused_kernel(N),
            out_shape=jax.ShapeDtypeStruct((N, H), jnp.float32),
            in_specs=[
                pl.BlockSpec(memory_space=pltpu.MemorySpace.SMEM),   # [b1b, b2b]
                pl.BlockSpec(memory_space=pltpu.MemorySpace.VMEM),   # x1
                pl.BlockSpec(memory_space=pltpu.MemorySpace.VMEM),   # x2
                pl.BlockSpec(memory_space=pltpu.MemorySpace.VMEM),   # W1a
                pl.BlockSpec(memory_space=pltpu.MemorySpace.VMEM),   # b1a
                pl.BlockSpec(memory_space=pltpu.MemorySpace.VMEM),   # w1b
                pl.BlockSpec(memory_space=pltpu.MemorySpace.VMEM),   # W2a
                pl.BlockSpec(memory_space=pltpu.MemorySpace.VMEM),   # b2a
                pl.BlockSpec(memory_space=pltpu.MemorySpace.VMEM),   # w2b
            ],
            out_specs=pl.BlockSpec(memory_space=pltpu.MemorySpace.VMEM),
            compiler_params=pltpu.CompilerParams(vmem_limit_bytes=32 << 20),
        )(bb, x1f, x2f, w1a_f, b1a_r, w1b_r, w2a_f, b2a_r, w2b_r)
        return out.reshape(B, S, H)

    # --------------------------- pass 1 --------------------------------------
    # Tile rows so each input tile is ~512 KiB, capped at 2048 rows.
    tn = max(8, min(2048, ((512 * 1024) // (H * 4)) // 8 * 8))
    tn = min(tn, max(8, (N // 8) * 8))
    grid_r = pl.cdiv(N, tn)

    w = pl.pallas_call(
        _make_pass1_kernel(N, tn, grid_r),
        out_shape=jax.ShapeDtypeStruct((1, 128), jnp.float32),
        grid=(grid_r,),
        in_specs=[
            pl.BlockSpec(memory_space=pltpu.MemorySpace.SMEM),       # [b1b, b2b]
            pl.BlockSpec((tn, H), lambda i: (i, 0)),                 # x1 tile
            pl.BlockSpec((tn, H), lambda i: (i, 0)),                 # x2 tile
            pl.BlockSpec((H, H), lambda i: (0, 0)),                  # W1a (resident)
            pl.BlockSpec((1, H), lambda i: (0, 0)),                  # b1a
            pl.BlockSpec((1, H), lambda i: (0, 0)),                  # w1b row
            pl.BlockSpec((H, H), lambda i: (0, 0)),                  # W2a (resident)
            pl.BlockSpec((1, H), lambda i: (0, 0)),                  # b2a
            pl.BlockSpec((1, H), lambda i: (0, 0)),                  # w2b row
        ],
        out_specs=pl.BlockSpec((1, 128), lambda i: (0, 0)),          # softmax weights
        scratch_shapes=[pltpu.VMEM((tn, H), jnp.float32),
                        pltpu.VMEM((tn, H), jnp.float32)],
        compiler_params=pltpu.CompilerParams(
            dimension_semantics=("arbitrary",),
            vmem_limit_bytes=32 << 20),
    )(bb, x1f, x2f, w1a_f, b1a_r, w1b_r, w2a_f, b2a_r, w2b_r)

    # --------------------------- pass 2 --------------------------------------
    # ~2 MiB tiles on the natural (N, H) view (lane-dense when H % 128 == 0;
    # reshaping to (*, 128) would force an XLA relayout copy when it isn't).
    tr = max(8, min(8192, ((2 << 20) // (H * 4)) // 8 * 8))
    tr = min(tr, max(8, (N // 8) * 8))
    grid_c = pl.cdiv(N, tr)
    if grid_c < 2 and N > 16:          # give both v7x TensorCores some work
        tr = max(8, (pl.cdiv(N, 2) // 8) * 8)
        grid_c = pl.cdiv(N, tr)

    out = pl.pallas_call(
        _combine_kernel,
        out_shape=jax.ShapeDtypeStruct((N, H), jnp.float32),
        grid=(grid_c,),
        in_specs=[
            pl.BlockSpec(memory_space=pltpu.MemorySpace.SMEM),       # (1,128) weights
            pl.BlockSpec((tr, H), lambda i: (i, 0)),
            pl.BlockSpec((tr, H), lambda i: (i, 0)),
        ],
        out_specs=pl.BlockSpec((tr, H), lambda i: (i, 0)),
        compiler_params=pltpu.CompilerParams(
            dimension_semantics=("parallel",),
            vmem_limit_bytes=32 << 20),
    )(w, x1f, x2f)

    return out.reshape(B, S, H)


# ---------------------------------------------------------------------------
# Pure-JAX reference mirroring the PyTorch forward (note the weight swap)
# ---------------------------------------------------------------------------
def cross_attention_ref(x1, x2, params):
    (w1a, b1a, w1b, b1b, w2a, b2a, w2b, b2b) = params
    s1 = jnp.tanh(x1 @ w1a + b1a) @ w1b + b1b
    s2 = jnp.tanh(x2 @ w2a + b2a) @ w2b + b2b
    w = jax.nn.softmax(jnp.stack([jnp.mean(s1), jnp.mean(s2)]))
    # PyTorch: output = w2 * input_1 + w1 * input_2
    return w[1] * x1 + w[0] * x2


def init_params(key, hidden_dim):
    """Deterministic init matching nn.Linear shapes (weights pre-transposed to (in, out))."""
    ks = jax.random.split(key, 8)
    bound_h = 1.0 / jnp.sqrt(hidden_dim)

    def u(k, shape, bound):
        return jax.random.uniform(k, shape, jnp.float32, -bound, bound)

    w1a = u(ks[0], (hidden_dim, hidden_dim), bound_h)   # Linear(H,H) weight^T
    b1a = u(ks[1], (hidden_dim,), bound_h)
    w1b = u(ks[2], (hidden_dim, 1), bound_h)            # Linear(H,1) weight^T
    b1b = u(ks[3], (1,), bound_h)
    w2a = u(ks[4], (hidden_dim, hidden_dim), bound_h)
    b2a = u(ks[5], (hidden_dim,), bound_h)
    w2b = u(ks[6], (hidden_dim, 1), bound_h)
    b2b = u(ks[7], (1,), bound_h)
    return (w1a, b1a, w1b, b1b, w2a, b2a, w2b, b2b)


if __name__ == "__main__":
    key = jax.random.PRNGKey(0)
    k1, k2, kp, k3, k4 = jax.random.split(key, 5)

    # Small shape consistent with the module (exercises the fused fast path).
    B, S, H = 2, 8, 32
    x1 = jax.random.normal(k1, (B, S, H), jnp.float32)
    x2 = jax.random.normal(k2, (B, S, H), jnp.float32)
    params = init_params(kp, H)

    fn = jax.jit(cross_attention_pallas)
    out = jax.block_until_ready(fn(x1, x2, params))
    ref = cross_attention_ref(x1, x2, params)
    assert out.shape == (B, S, H)
    assert jnp.allclose(out, ref, rtol=1e-4, atol=1e-4), "fast-path mismatch vs reference"

    # Larger shape forced through the two-pass path (incl. ragged last tile).
    B2, S2, H2 = 2, 4101, 32
    y1 = jax.random.normal(k3, (B2, S2, H2), jnp.float32)
    y2 = jax.random.normal(k4, (B2, S2, H2), jnp.float32)
    fn2 = jax.jit(lambda a, b, p: cross_attention_pallas(a, b, p, force_two_pass=True))
    out2 = jax.block_until_ready(fn2(y1, y2, params))
    ref2 = cross_attention_ref(y1, y2, params)
    assert out2.shape == (B2, S2, H2)
    assert jnp.allclose(out2, ref2, rtol=1e-4, atol=1e-4), "two-pass mismatch vs reference"

    print("KERNEL_OK")
</pallas_src>

<mosaic_0001>
module attributes {stable_mosaic.version = 11 : i64} {
  func.func @kernel(%arg0: memref<2xf32, #tpu.memory_space<smem>>, %arg1: memref<16x32xf32, #tpu.memory_space<vmem>>, %arg2: memref<16x32xf32, #tpu.memory_space<vmem>>, %arg3: memref<32x32xf32, #tpu.memory_space<vmem>>, %arg4: memref<1x32xf32, #tpu.memory_space<vmem>>, %arg5: memref<1x32xf32, #tpu.memory_space<vmem>>, %arg6: memref<32x32xf32, #tpu.memory_space<vmem>>, %arg7: memref<1x32xf32, #tpu.memory_space<vmem>>, %arg8: memref<1x32xf32, #tpu.memory_space<vmem>>, %arg9: memref<16x32xf32, #tpu.memory_space<vmem>>) attributes {dimension_semantics = [], scalar_prefetch = 0 : i64, scratch_operands = 0 : i64, tpu.core_type = #tpu.core_type<tc>} {
    %c0 = arith.constant 0 : index
    %c0_0 = arith.constant 0 : index
    %0 = vector.load %arg1[%c0, %c0_0] : memref<16x32xf32, #tpu.memory_space<vmem>>, vector<16x32xf32>
    %c0_1 = arith.constant 0 : index
    %c0_2 = arith.constant 0 : index
    %1 = vector.load %arg2[%c0_1, %c0_2] : memref<16x32xf32, #tpu.memory_space<vmem>>, vector<16x32xf32>
    %c0_3 = arith.constant 0 : index
    %c0_4 = arith.constant 0 : index
    %2 = vector.load %arg3[%c0_3, %c0_4] : memref<32x32xf32, #tpu.memory_space<vmem>>, vector<32x32xf32>
    %cst = arith.constant dense<0.000000e+00> : vector<16x32xf32>
    %3 = tpu.matmul %0, %2, %cst {dimension_numbers = #tpu.dot_dimension_numbers<[1], [0], [0], [1], [0, 0, 1, 1], [], []>} : vector<16x32xf32>, vector<32x32xf32>, vector<16x32xf32> -> vector<16x32xf32>
    %c0_5 = arith.constant 0 : index
    %c0_6 = arith.constant 0 : index
    %4 = vector.load %arg4[%c0_5, %c0_6] : memref<1x32xf32, #tpu.memory_space<vmem>>, vector<1x32xf32>
    %5 = vector.broadcast %4 : vector<1x32xf32> to vector<16x32xf32>
    %6 = arith.addf %3, %5 : vector<16x32xf32>
    %7 = math.tanh %6 : vector<16x32xf32>
    %c0_7 = arith.constant 0 : index
    %c0_8 = arith.constant 0 : index
    %8 = vector.load %arg6[%c0_7, %c0_8] : memref<32x32xf32, #tpu.memory_space<vmem>>, vector<32x32xf32>
    %cst_9 = arith.constant dense<0.000000e+00> : vector<16x32xf32>
    %9 = tpu.matmul %1, %8, %cst_9 {dimension_numbers = #tpu.dot_dimension_numbers<[1], [0], [0], [1], [0, 0, 1, 1], [], []>} : vector<16x32xf32>, vector<32x32xf32>, vector<16x32xf32> -> vector<16x32xf32>
    %c0_10 = arith.constant 0 : index
    %c0_11 = arith.constant 0 : index
    %10 = vector.load %arg7[%c0_10, %c0_11] : memref<1x32xf32, #tpu.memory_space<vmem>>, vector<1x32xf32>
    %11 = vector.broadcast %10 : vector<1x32xf32> to vector<16x32xf32>
    %12 = arith.addf %9, %11 : vector<16x32xf32>
    %13 = math.tanh %12 : vector<16x32xf32>
    %cst_12 = arith.constant dense<0.000000e+00> : vector<32xf32>
    %14 = vector.multi_reduction <add>, %7, %cst_12 [0] : vector<16x32xf32> to vector<32xf32>
    %15 = vector.shape_cast %14 : vector<32xf32> to vector<1x32xf32>
    %cst_13 = arith.constant dense<0.000000e+00> : vector<32xf32>
    %16 = vector.multi_reduction <add>, %13, %cst_13 [0] : vector<16x32xf32> to vector<32xf32>
    %17 = vector.shape_cast %16 : vector<32xf32> to vector<1x32xf32>
    %c0_14 = arith.constant 0 : index
    %c0_15 = arith.constant 0 : index
    %18 = vector.load %arg5[%c0_14, %c0_15] : memref<1x32xf32, #tpu.memory_space<vmem>>, vector<1x32xf32>
    %19 = arith.mulf %15, %18 : vector<1x32xf32>
    %cst_16 = arith.constant dense<0.000000e+00> : vector<1xf32>
    %20 = vector.multi_reduction <add>, %19, %cst_16 [1] : vector<1x32xf32> to vector<1xf32>
    %21 = vector.shape_cast %20 : vector<1xf32> to vector<1x1xf32>
    %cst_17 = arith.constant 6.250000e-02 : f32
    %22 = vector.broadcast %cst_17 : f32 to vector<1x1xf32>
    %23 = arith.mulf %21, %22 : vector<1x1xf32>
    %c0_18 = arith.constant 0 : index
    %24 = memref.load %arg0[%c0_18] : memref<2xf32, #tpu.memory_space<smem>>
    %25 = vector.broadcast %24 : f32 to vector<1x1xf32>
    %26 = arith.addf %23, %25 : vector<1x1xf32>
    %c0_19 = arith.constant 0 : index
    %c0_20 = arith.constant 0 : index
    %27 = vector.load %arg8[%c0_19, %c0_20] : memref<1x32xf32, #tpu.memory_space<vmem>>, vector<1x32xf32>
    %28 = arith.mulf %17, %27 : vector<1x32xf32>
    %cst_21 = arith.constant dense<0.000000e+00> : vector<1xf32>
    %29 = vector.multi_reduction <add>, %28, %cst_21 [1] : vector<1x32xf32> to vector<1xf32>
    %30 = vector.shape_cast %29 : vector<1xf32> to vector<1x1xf32>
    %cst_22 = arith.constant 6.250000e-02 : f32
    %31 = vector.broadcast %cst_22 : f32 to vector<1x1xf32>
    %32 = arith.mulf %30, %31 : vector<1x1xf32>
    %c1 = arith.constant 1 : index
    %33 = memref.load %arg0[%c1] : memref<2xf32, #tpu.memory_space<smem>>
    %34 = vector.broadcast %33 : f32 to vector<1x1xf32>
    %35 = arith.addf %32, %34 : vector<1x1xf32>
    %36 = arith.maximumf %26, %35 : vector<1x1xf32>
    %37 = arith.subf %26, %36 : vector<1x1xf32>
    %38 = math.exp %37 : vector<1x1xf32>
    %39 = arith.subf %35, %36 : vector<1x1xf32>
    %40 = math.exp %39 : vector<1x1xf32>
    %41 = arith.addf %38, %40 : vector<1x1xf32>
    %cst_23 = arith.constant 1.000000e+00 : f32
    %42 = vector.broadcast %cst_23 : f32 to vector<1x1xf32>
    %43 = arith.divf %42, %41 : vector<1x1xf32>
    %44 = arith.mulf %38, %43 : vector<1x1xf32>
    %45 = arith.mulf %40, %43 : vector<1x1xf32>
    %46 = vector.broadcast %45 : vector<1x1xf32> to vector<16x32xf32>
    %47 = arith.mulf %0, %46 : vector<16x32xf32>
    %48 = vector.broadcast %44 : vector<1x1xf32> to vector<16x32xf32>
    %49 = arith.mulf %1, %48 : vector<16x32xf32>
    %50 = arith.addf %47, %49 : vector<16x32xf32>
    %c0_24 = arith.constant 0 : index
    %c0_25 = arith.constant 0 : index
    %51 = vector.load %arg9[%c0_24, %c0_25] : memref<16x32xf32, #tpu.memory_space<vmem>>, vector<16x32xf32>
    tpu.vector_store %arg9[%c0_24, %c0_25], %50 {strides = array<i32>} : memref<16x32xf32, #tpu.memory_space<vmem>>, vector<16x32xf32>,
    return
  }
}

</mosaic_0001>

<bundles_post_ra>
// kernel: cross_attention_pallas.1
= control target key start
LH: loop header
LB: loop body
LE: loop exit
PB: predicated region body
PF: predicated region fallthrough
CT: control target
= control target key end

     0   :  { %14 = vsyncpa [#allocation5], 0  ;;  %s654_s0 = inlined_call_operand.vmem [shape: f32[2], index: 0, kind: input, shape index: {}]   ;;  %s655_s1 = inlined_call_operand.vmem [shape: f32[16,32], index: 1, kind: input, shape index: {}]   ;;  %s656_s2 = inlined_call_operand.hbm [shape: f32[16,32], index: 2, kind: input, shape index: {}]   ;;  %s657_s3 = inlined_call_operand.hbm [shape: f32[32,32], index: 3, kind: input, shape index: {}]   ;;  %s658_s4 = inlined_call_operand.vmem [shape: f32[1,32], index: 4, kind: input, shape index: {}]   ;;  %s659_s5 = inlined_call_operand.vmem [shape: f32[1,32], index: 5, kind: input, shape index: {}]   ;;  %s660_s6 = inlined_call_operand.hbm [shape: f32[32,32], index: 6, kind: input, shape index: {}]   ;;  %s661_s7 = inlined_call_operand.vmem [shape: f32[1,32], index: 7, kind: input, shape index: {}]   ;;  %s662_s8 = inlined_call_operand.vmem [shape: f32[1,32], index: 8, kind: input, shape index: {}]   ;;  %s663_s9 = inlined_call_operand.hbm [shape: f32[16,32], index: 9, kind: output, shape index: {}]  }
   0x1   :  { %15 = vsyncpa [#allocation3], 0 }
   0x2   :  { %16 = vsyncpa [#allocation8], 0 }
   0x3   :  { %17 = vsyncpa [#allocation4], 0  ;;  %s24_s11 = sshll.u32 %s654_s0, 4  ;;  %s526_s12 = smov [#allocation7]   ;;  %s25_s11 = int_to_ptr.vmem [resolvable:$true] %s24_s11 }
   0x4   :  { %s47_s13 = sshll.u32 %s526_s12, 4  ;;  %s48_s13 = int_to_ptr.vmem [resolvable:$true] %s47_s13 }
   0x5   :  { %s434_s14 = scalar_lea.vmem %s48_s13, 512  ;;  %p439_p1 = scmp.lt.s32.totalorder %s48_s13, %s48_s13 }
   0x6   :  { %p435_p0 = scmp.ne.s32.totalorder %s48_s13, %s434_s14  ;;  %p440_p2 = scmp.lt.s32.totalorder %s434_s14, %s434_s14 }
   0x8   :  { %p441_p3 = por %p440_p2, %p439_p1 }
   0xa   :  { %p442_p4 = pnand %p441_p3, %p435_p0 }
   0xc   :  { %445 = shalt.err (!%p442_p4)
}
   0xd   :  { %s527_s15 = smov 128   ;;  %s528_s16 = smov 8  }
   0xe   :  { %53 = dma.hbm_to_vmem [thread:$0]  %s657_s3, 512, %s48_s13, [#allocation8], %s527_s15, %s527_s15, %s528_s16  }
   0xf   :  { %s446_s0 = scalar_lea.vmem %s25_s11, 16  ;;  %p451_p6 = scmp.lt.s32.totalorder %s25_s11, %s25_s11 }
  0x10   :  { %p447_p5 = scmp.ne.s32.totalorder %s25_s11, %s446_s0  ;;  %p452_p7 = scmp.lt.s32.totalorder %s446_s0, %s446_s0 }
  0x12   :  { %p453_p8 = por %p452_p7, %p451_p6 }
  0x14   :  { %p454_p9 = pnand %p453_p8, %p447_p5 }
  0x16   :  { %457 = shalt.err (!%p454_p9)
}
  0x17   :  { %s529_s19 = smov [#allocation2]   ;;  %s530_s20 = smov [#allocation6]  }
  0x18   :  { %27 = dma.vmem_to_smem %s25_s11, 16, %s529_s19, [#allocation5]  }
  0x19   :  { %s35_s21 = sshll.u32 %s530_s20, 4  ;;  %s531_s22 = smov [#allocation9]   ;;  %s36_s21 = int_to_ptr.vmem [resolvable:$true] %s35_s21 }
  0x1a   :  { %s63_s23 = sshll.u32 %s531_s22, 4  ;;  %s466_s24 = scalar_lea.vmem %s36_s21, 256  ;;  %s64_s23 = int_to_ptr.vmem [resolvable:$true] %s63_s23 }
  0x1b   :  { %p467_p10 = scmp.ne.s32.totalorder %s36_s21, %s466_s24  ;;  %p471_p11 = scmp.lt.s32.totalorder %s36_s21, %s36_s21 }
  0x1c   :  { %p472_p12 = scmp.lt.s32.totalorder %s466_s24, %s466_s24 }
  0x1e   :  { %p473_p13 = por %p472_p12, %p471_p11 }
  0x20   :  { %p474_p0 = pnand %p473_p13, %p467_p10 }
  0x22   :  { %477 = shalt.err (!%p474_p0)
}
  0x23   :  { %41 = dma.hbm_to_vmem [thread:$0]  %s656_s2, 256, %s36_s21, [#allocation3], %s527_s15, %s527_s15, %s528_s16  }
  0x24   :  { %s486_s26 = scalar_lea.vmem %s64_s23, 512  ;;  %p491_p2 = scmp.lt.s32.totalorder %s64_s23, %s64_s23 }
  0x25   :  { %p487_p1 = scmp.ne.s32.totalorder %s64_s23, %s486_s26  ;;  %p492_p3 = scmp.lt.s32.totalorder %s486_s26, %s486_s26 }
  0x27   :  { %p493_p4 = por %p492_p3, %p491_p2 }
  0x29   :  { %p494_p5 = pnand %p493_p4, %p487_p1 }
  0x2b   :  { %497 = shalt.err (!%p494_p5)
}
  0x2c   :  { %69 = dma.hbm_to_vmem [thread:$0]  %s660_s6, 512, %s64_s23, [#allocation8], %s527_s15, %s527_s15, %s528_s16  }
  0x2d   :  { %518 = dma.done.wait [#allocation5], 16  }
  0x2e   :  { %519 = vsyncadd [#allocation5], 4294967280 }
  0x2f   :  { %520 = dma.done.wait [#allocation3], 256  }
  0x30   :  { %521 = vsyncadd [#allocation3], 4294967040 }
  0x31   :  { %522 = dma.done.wait [#allocation8], 1024  }
  0x32   :  { %523 = vsyncadd [#allocation8], 4294966272 }
  0x33   :  { %86 = sfence }
  0x34   :  { %v94_v0 = vld [vmem:[#allocation7 + $0x18] sm:$0xff]  ;;  %v93_v2 = vld [vmem:[#allocation7 + $0x10] sm:$0xff]  ;;  %v92_v4 = vld [vmem:[#allocation7 + $0x8] sm:$0xff]  ;;  %vm102_vm0 = vcmask 261120   ;;  %vm300_vm1 = vcmask 253952   ;;  %s305_s17 = sld [smem:[#allocation2]] }
  0x35   :  { %v189_v1 = vld [vmem:[#allocation9 + $0x18] sm:$0xff]  ;;  %383 = vmatprep.subr.mxu0 %v94_v0  ;;  %v188_v3 = vld [vmem:[#allocation9 + $0x10] sm:$0xff]  ;;  %v187_v5 = vld [vmem:[#allocation9 + $0x8] sm:$0xff]  ;;  %s370_s18 = sld [smem:[#allocation2 + $0x1]] }
  0x36   :  { %394 = vmatprep.subr.mxu1 %v189_v1  ;;  %384 = vmatpush3.msra.mxu0 %v94_v0  ;;  %v91_v6 = vld [vmem:[#allocation7] sm:$0xff]  ;;  %v607_v8 = vld [vmem:[%s655_s1] sm:$0xff]  ;;  %v614_v10 = vld [vmem:[%s655_s1 + $0x8] sm:$0xff] }
  0x37   :  { %395 = vmatpush3.msra.mxu1 %v189_v1  ;;  %385 = vmatprep.subr.mxu0 %v93_v2  ;;  %v186_v7 = vld [vmem:[#allocation9] sm:$0xff]  ;;  %v609_v9 = vld [vmem:[#allocation6] sm:$0xff]  ;;  %v616_v11 = vld [vmem:[#allocation6 + $0x8] sm:$0xff] }
  0x38   :  { %396 = vmatprep.subr.mxu1 %v188_v3  ;;  %386 = vmatpush3.msra.mxu0 %v93_v2  ;;  %v364_v12 = vld [vmem:[%s658_s4] ss:$0 sm:$0xff]  ;;  %v329_v2 = vlaneseq }
  0x39   :  { %397 = vmatpush3.msra.mxu1 %v188_v3  ;;  %387 = vmatprep.subr.mxu0 %v92_v4  ;;  %v367_v13 = vld [vmem:[%s661_s7] ss:$0 sm:$0xff] }
  0x3a   :  { %398 = vmatprep.subr.mxu1 %v187_v5  ;;  %388 = vmatpush3.msra.mxu0 %v92_v4  ;;  %v298_v41 = vld [vmem:[%s659_s5] sm:$0x1]  ;;  %v306_v52 = vstv %s305_s17  ;;  %v330_v3 = vshrl.u32 %v329_v2, 7  ;;  %s532_s5 = smov [#allocation10]  }
  0x3b   :  { %399 = vmatpush3.msra.mxu1 %v187_v5  ;;  %389 = vmatprep.subr.mxu0 %v91_v6  ;;  %v308_v45 = vld [vmem:[%s662_s8] sm:$0x1]  ;;  %v315_v53 = vstv %s370_s18  ;;  %s350_s8 = sshll.u32 %s532_s5, 4  ;;  %s351_s8 = int_to_ptr.vmem [resolvable:$true] %s350_s8 }
  0x3c   :  { %400 = vmatprep.subr.mxu1 %v186_v7  ;;  %390 = vmatpush3.msra.mxu0 %v91_v6  ;;  %v331_v4 = vsub.s32 0, %v330_v3  ;;  %s498_s0 = scalar_lea.vmem %s351_s8, 256  ;;  %p503_p7 = scmp.lt.s32.totalorder %s351_s8, %s351_s8 }
  0x3d   :  { %391 = vmatprep.mubr.msk.f32.mxu0 %vm102_vm0, %v607_v8  ;;  %401 = vmatpush3.msra.mxu1 %v186_v7  ;;  %p499_p6 = scmp.ne.s32.totalorder %s351_s8, %s498_s0  ;;  %p504_p8 = scmp.lt.s32.totalorder %s498_s0, %s498_s0 }
  0x3e   :  { %402 = vmatprep.mubr.msk.f32.mxu1 %vm102_vm0, %v609_v9  ;;  %392 = vmatmul.mubr.msk.f32.vlgmr.msra.gmra.mxu0 %vm102_vm0, %v614_v10 }
  0x3f   :  { %403 = vmatmul.mubr.msk.f32.vlgmr.msra.gmra.mxu1 %vm102_vm0, %v616_v11  ;;  %p505_p9 = por %p504_p8, %p503_p7 }
  0x41   :  { %p506_p10 = pnand %p505_p9, %p499_p6 }
  0xfe   :  { %v393_v14 = vpop.f32.mrf.mxu0 }
  0xff   :  { %v404_v15 = vpop.f32.mrf.mxu1  ;;  %v181_v16 = vadd.f32 %v393_v14, %v364_v12 }
 0x100   :  { %v275_v17 = vadd.f32 %v404_v15, %v367_v13  ;;  %v175_v18 = vpop.f32.mrf.mxu0 }
 0x101   :  { %v269_v19 = vpop.f32.mrf.mxu1  ;;  %412 = vtanh.f32 %v181_v16  ;;  %v176_v20 = vadd.f32 %v364_v12, %v175_v18 }
 0x102   :  { %v270_v21 = vadd.f32 %v367_v13, %v269_v19  ;;  %414 = vtanh.f32 %v275_v17 }
 0x103   :  { %416 = vtanh.f32 %v176_v20 }
 0x104   :  { %418 = vtanh.f32 %v270_v21 }
 0x10e   :  { %v413_v22 = vpop.eup %412 }
 0x10f   :  { %v415_v23 = vpop.eup %414  ;;  %v281_v28 = vsel %vm102_vm0, %v413_v22, 0.0 }
 0x110   :  { %v417_v24 = vpop.eup %416  ;;  %v290_v25 = vsel %vm102_vm0, %v415_v23, 0.0 }
 0x111   :  { %v419_v26 = vpop.eup %418  ;;  %v280_v27 = vsel %vm102_vm0, %v417_v24, 0.0 }
 0x112   :  { %v282_v29 = vadd.f32 %v281_v28, %v280_v27  ;;  %v289_v30 = vsel %vm102_vm0, %v419_v26, 0.0 }
 0x113   :  { %v291_v31 = vadd.f32 %v290_v25, %v289_v30 }
 0x114   :  { %v283_v32 = vrot.slane %v282_v29, 4 }
 0x115   :  { %v292_v33 = vrot.slane %v291_v31, 4 }
 0x116   :  { %v284_v34 = vadd.f32 %v283_v32, %v282_v29 }
 0x117   :  { %v293_v35 = vadd.f32 %v292_v33, %v291_v31 }
 0x118   :  { %v285_v36 = vrot.slane %v284_v34, 2 }
 0x119   :  { %v294_v37 = vrot.slane %v293_v35, 2 }
 0x11a   :  { %v286_v38 = vadd.f32 %v285_v36, %v284_v34 }
 0x11b   :  { %v295_v39 = vadd.f32 %v294_v37, %v293_v35 }
 0x11c   :  { %v287_v40 = vrot.slane %v286_v38, 1 }
 0x11d   :  { %v296_v42 = vrot.slane %v295_v39, 1 }
 0x11e   :  { %v288_v43 = vadd.f32 %v287_v40, %v286_v38 }
 0x11f   :  { %v297_v44 = vadd.f32 %v296_v42, %v295_v39 }
 0x120   :  { %v299_v46 = vmul.f32 %v298_v41, %v288_v43 }
 0x121   :  { %v309_v48 = vmul.f32 %v308_v45, %v297_v44 }
 0x122   :  { %v301_v47 = vsel %vm300_vm1, %v299_v46, 0.0 }
 0x123   :  { %302 = vadd.xlane.f32.xlu0 %v301_v47  ;;  %v310_v49 = vsel %vm300_vm1, %v309_v48, 0.0 }
 0x127   :  { %311 = vadd.xlane.f32.xlu0 %v310_v49 }
 0x1ac   :  { %v303_v50 = vpop.xlane.xlu0 %302 }
 0x1ad   :  { %v304_v51 = vmul.f32 0.0625, %v303_v50 }
 0x1af   :  { %v307_v56 = vadd.f32 %v306_v52, %v304_v51 }
 0x1b0   :  { %v312_v54 = vpop.xlane.xlu0 %311 }
 0x1b1   :  { %v313_v55 = vmul.f32 0.0625, %v312_v54 }
 0x1b3   :  { %v316_v57 = vadd.f32 %v315_v53, %v313_v55 }
 0x1b5   :  { %v317_v58 = vmax.f32 %v307_v56, %v316_v57 }
 0x1b7   :  { %v318_v59 = vsub.f32 %v307_v56, %v317_v58  ;;  %v321_v60 = vsub.f32 %v316_v57, %v317_v58 }
 0x1b9   :  { %v319_v61 = vmul.f32 1.442695, %v318_v59  ;;  %v322_v62 = vmul.f32 1.442695, %v321_v60 }
 0x1bb   :  { %420 = vpow2.f32 %v319_v61 }
 0x1bc   :  { %422 = vpow2.f32 %v322_v62 }
 0x1c8   :  { %v421_v63 = vpop.eup %420 }
 0x1c9   :  { %v423_v0 = vpop.eup %422 }
 0x1ca   :  { %v324_v1 = vadd.f32 %v423_v0, %v421_v63 }
 0x1cc   :  { %424 = vrcp.f32 %v324_v1 }
 0x1d9   :  { %v425_v5 = vpop.eup %424 }
 0x1da   :  { %v327_v6 = vmul.f32 %v425_v5, %v421_v63  ;;  %v328_v7 = vmul.f32 %v425_v5, %v423_v0 }
 0x1dc   :  { %v332_v12 = vrot.slane %v328_v7, %v331_v4  ;;  %v338_v13 = vrot.slane %v327_v6, %v331_v4 }
 0x1de   :  { %v333_v14 = vmul.f32 %v332_v12, %v607_v8  ;;  %v334_v15 = vmul.f32 %v332_v12, %v614_v10  ;;  %v339_v16 = vmul.f32 %v338_v13, %v609_v9  ;;  %v340_v17 = vmul.f32 %v338_v13, %v616_v11 }
 0x1e0   :  { %v341_v18 = vadd.f32 %v339_v16, %v333_v14  ;;  %v342_v19 = vadd.f32 %v340_v17, %v334_v15 }
 0x1e2   :  { %343 = vst.msk [vmem:[#allocation10] sm:$0xff] %vm102_vm0, %v341_v18  ;;  %344 = vst.msk [vmem:[#allocation10 + $0x8] sm:$0xff] %vm102_vm0, %v342_v19 }
 0x1e3   :  { %509 = shalt.err (!%p506_p10)
}
 0x1e4   :  { %356 = dma.vmem_to_hbm [thread:$0]  %s351_s8, 256, %s663_s9, [#allocation4], %s527_s15, %s527_s15, %s528_s16  }
 0x1e5   :  { %524 = dma.done.wait [#allocation4], 256  }
 0x1e6   :  { %525 = vsyncadd [#allocation4], 4294967040 }
 0x1e7   :  { %360 = vsyncpa [#allocation3], 1 }
 0x1e8   :  { %361 = vsyncpa [#allocation8], 1 }
 0x1e9   :  { %362 = vsyncpa [#allocation4], 1 }
 0x1ea   :  { %363 = vsyncpa [#allocation5], 1 }

</bundles_post_ra>
